<compile_context>
chip_gen: v7x
topology: tpu7x:2x2x1
jax: 0.10.0
libtpu: 0.0.40
codegen_flags: <defaults>
</compile_context>

<pallas_src>
import functools

import jax
import jax.numpy as jnp
from jax.experimental import pallas as pl
from jax.experimental.pallas import tpu as pltpu


# ----------------------------------------------------------------------------- pass 1
def _per_sample_loss_kernel(x_ref, xt_ref, loss_ref,
                            m_acc, s_acc, tsum_acc,
                            *, num_classes, epsilon):
    j = pl.program_id(1)
    n_c = pl.num_programs(1)

    @pl.when(j == 0)
    def _():
        m_acc[...] = jnp.full_like(m_acc, -jnp.inf)
        s_acc[...] = jnp.zeros_like(s_acc)
        tsum_acc[...] = jnp.zeros_like(tsum_acc)

    tb, tc = x_ref.shape
    needs_mask = (num_classes % tc) != 0          # trace-time: padded last class tile?
    use_mxu_rowsum = x_ref.dtype == jnp.bfloat16  # MXU offload only where it's exact & useful

    def lse_update(xv):
        # Online log-sum-exp over the class axis. exp(-inf)=0 covers both the very first
        # tile (m_acc == -inf => rescale 0) and masked/padded columns (xv == -inf).
        tile_max = jnp.max(xv, axis=1, keepdims=True)            # (TB, 1)
        m_new = jnp.maximum(m_acc[...], tile_max)
        s_acc[...] = (s_acc[...] * jnp.exp(m_acc[...] - m_new)
                      + jnp.sum(jnp.exp(xv - m_new), axis=1, keepdims=True))
        m_acc[...] = m_new

    def row_sum_unmasked(xn, xf32):
        if use_mxu_rowsum:
            # Offload the plain row-sum to the idle MXU (bf16 inputs, exact f32 accumulate).
            ones = jnp.ones((tc, 128), dtype=xn.dtype)
            return jnp.dot(xn, ones, preferred_element_type=jnp.float32)[:, 0:1]
        return jnp.sum(xf32, axis=1, keepdims=True)

    def steady_update():
        xn = x_ref[...]                                          # native dtype (TB, TC)
        x = xn.astype(jnp.float32)
        lse_update(x)
        tsum_acc[...] += row_sum_unmasked(xn, x)

    if needs_mask:
        # Only the last class tile has padded columns; keep the mask work off the
        # steady-state path.
        @pl.when(j < n_c - 1)
        def _():
            steady_update()

        @pl.when(j == n_c - 1)
        def _():
            x = x_ref[...].astype(jnp.float32)
            col = jax.lax.broadcasted_iota(jnp.int32, (tb, tc), 1) + j * tc
            valid = col < num_classes
            lse_update(jnp.where(valid, x, -jnp.inf))
            tsum_acc[...] += jnp.sum(jnp.where(valid, x, 0.0), axis=1, keepdims=True)
    else:
        steady_update()

    @pl.when(j == n_c - 1)
    def _():
        lse = m_acc[...] + jnp.log(s_acc[...])                   # (TB, 1)
        lp_t = xt_ref[...] - lse                                 # log p[target]
        lp_sum = tsum_acc[...] - num_classes * lse               # sum_c log p[c]
        # Unscaled loss (the /num_classes is folded into pass 2's final divide).
        loss = -((1.0 - epsilon) * lp_t + (epsilon / num_classes) * lp_sum)
        # Clamp: mathematically >= 0, guard against a rounded -0.0 / tiny negative so the
        # int32 bit-pattern ordering trick in pass 2 is always valid.
        loss_ref[...] = jnp.maximum(loss, 0.0)


# ----------------------------------------------------------------------------- pass 2
def _ohem_select_kernel(loss_ref, out_ref, *, keep_num, num_classes):
    loss = loss_ref[...]                                         # (B, 1) f32, all >= 0
    # Non-negative f32 bit patterns viewed as int32 are order-preserving.
    keys = pltpu.bitcast(loss, jnp.int32)
    k = jnp.int32(keep_num)

    # Largest integer T with count(keys >= T) >= k  ==  bit pattern of k-th largest loss.
    def body(_, carry):
        lo, hi = carry
        mid = lo + (hi - lo + 1) // 2
        take = jnp.sum((keys >= mid).astype(jnp.int32)) >= k
        lo = jnp.where(take, mid, lo)
        hi = jnp.where(take, hi, mid - 1)
        return lo, hi

    thr_key, _ = jax.lax.fori_loop(0, 32, body, (jnp.int32(0), jnp.max(keys)))

    # The bisection converges to an attained key; recover its float value (losses >= 0,
    # so 0.0 is a safe "else"). One extra full-width pass, negligible at us scale.
    thr = jnp.max(jnp.where(keys == thr_key, loss, 0.0))

    gt = keys > thr_key
    sum_gt = jnp.sum(jnp.where(gt, loss, 0.0))
    cnt_gt = jnp.sum(gt.astype(jnp.int32))
    kept = sum_gt + (k - cnt_gt).astype(jnp.float32) * thr       # exact top-k sum (ties ok)

    out_ref[0, 0] = kept / jnp.float32(keep_num * num_classes)


# ----------------------------------------------------------------------------- wrapper
def cross_entropy_label_smooth_ohem(inputs, targets, *, num_classes,
                                    epsilon=0.1, ohem_ratio=0.7,
                                    block_b=None, block_c=None):
    """inputs: (B, num_classes) float logits (any float dtype); targets: (B,) int ids
    in [0, num_classes)."""
    B, C = inputs.shape
    assert C == num_classes
    keep_num = min(B, int(B * ohem_ratio))
    assert keep_num > 0, "keep_num must be > 0 (batch too small for ohem_ratio)"

    # Target logit gathered once here (B elements, negligible HBM) so the kernel never
    # scans for the label. 'clip' keeps any out-of-range label deterministic.
    x_t = jnp.take_along_axis(inputs, targets.astype(jnp.int32)[:, None],
                              axis=1, mode="clip").astype(jnp.float32)      # (B, 1)

    # Tile defaults: big lane-dense class tiles to amortize grid-step overhead; batch
    # split into >=2 "parallel" steps whenever possible so v7x's two TensorCores both
    # get work.  256x8192 f32 double-buffered = 16 MiB -> fits v5e/v6e/v7x VMEM.
    if block_c is None:
        block_c = C if C <= 8192 else 8192
    if block_b is None:
        if B <= 8:
            block_b = B
        else:
            half = -(-B // 2)                      # ceil(B/2)
            block_b = min(256, -(-half // 8) * 8)  # round up to a multiple of 8

    grid = (pl.cdiv(B, block_b), pl.cdiv(C, block_c))

    per_sample = pl.pallas_call(
        functools.partial(_per_sample_loss_kernel,
                          num_classes=num_classes, epsilon=float(epsilon)),
        out_shape=jax.ShapeDtypeStruct((B, 1), jnp.float32),
        grid=grid,
        in_specs=[
            # Logits stream in their native dtype; cast to f32 happens in-register.
            # (If DMA ever becomes exposed, add pipeline_mode=pl.Buffered(3) here.)
            pl.BlockSpec((block_b, block_c), lambda i, j: (i, j)),
            pl.BlockSpec((block_b, 1), lambda i, j: (i, 0)),     # gathered target logits
        ],
        out_specs=pl.BlockSpec((block_b, 1), lambda i, j: (i, 0)),
        scratch_shapes=[pltpu.VMEM((block_b, 1), jnp.float32)] * 3,  # m, s, tsum
        compiler_params=pltpu.CompilerParams(
            dimension_semantics=("parallel", "arbitrary"),
            vmem_limit_bytes=48 * 1024 * 1024,
        ),
    )(inputs, x_t)

    # Per-sample losses go straight into pass 2 as (B, 1): no reshape, no relayout copy.
    out = pl.pallas_call(
        functools.partial(_ohem_select_kernel,
                          keep_num=keep_num, num_classes=num_classes),
        out_shape=jax.ShapeDtypeStruct((1, 1), jnp.float32),
        in_specs=[pl.BlockSpec(memory_space=pltpu.MemorySpace.VMEM)],
        out_specs=pl.BlockSpec(memory_space=pltpu.MemorySpace.SMEM),
    )(per_sample)
    return out[0, 0]


# ----------------------------------------------------------------------------- reference
def _reference(inputs, targets, *, num_classes, epsilon=0.1, ohem_ratio=0.7):
    """Pure-JAX reference mirroring the PyTorch forward."""
    B = inputs.shape[0]
    log_probs = jax.nn.log_softmax(inputs.astype(jnp.float32), axis=1)
    onehot = jax.nn.one_hot(targets, num_classes, dtype=jnp.float32)
    smooth = (1.0 - epsilon) * onehot + epsilon / num_classes
    per_sample = jnp.mean(-smooth * log_probs, axis=1)
    keep_num = min(B, int(B * ohem_ratio))
    sorted_losses = jnp.sort(per_sample)[::-1]
    kept = sorted_losses[:keep_num] if keep_num < B else sorted_losses
    return jnp.sum(kept) / keep_num


if __name__ == "__main__":
    key = jax.random.PRNGKey(0)
    k1, k2, k3, k4 = jax.random.split(key, 4)

    # --- Test 1: small single-tile case (f32) ---
    num_classes, batch = 16, 8
    x = jax.random.normal(k1, (batch, num_classes), dtype=jnp.float32)
    t = jax.random.randint(k2, (batch,), 0, num_classes, dtype=jnp.int32)
    out = cross_entropy_label_smooth_ohem(x, t, num_classes=num_classes)
    out = jax.block_until_ready(out)
    ref = _reference(x, t, num_classes=num_classes)
    assert jnp.allclose(out, ref, rtol=1e-5, atol=1e-6), (out, ref)

    # --- Test 2: f32 multi-tile path, partial batch tiles + masked last class tile ---
    num_classes2, batch2 = 200, 20
    x2 = jax.random.normal(k3, (batch2, num_classes2), dtype=jnp.float32)
    t2 = jax.random.randint(k4, (batch2,), 0, num_classes2, dtype=jnp.int32)
    out2 = cross_entropy_label_smooth_ohem(x2, t2, num_classes=num_classes2,
                                           block_b=8, block_c=128)
    out2 = jax.block_until_ready(out2)
    ref2 = _reference(x2, t2, num_classes=num_classes2)
    assert jnp.allclose(out2, ref2, rtol=1e-5, atol=1e-6), (out2, ref2)

    # --- Test 3: native bf16 logits, single tile (MXU row-sum path) ---
    x_bf16 = x.astype(jnp.bfloat16)
    out3 = cross_entropy_label_smooth_ohem(x_bf16, t, num_classes=num_classes)
    out3 = jax.block_until_ready(out3)
    ref3 = _reference(x_bf16.astype(jnp.float32), t, num_classes=num_classes)
    assert jnp.allclose(out3, ref3, rtol=1e-4, atol=1e-5), (out3, ref3)

    # --- Test 4: bf16 multi-tile (MXU steady tiles + masked last tile + partial batch) ---
    x2_bf16 = x2.astype(jnp.bfloat16)
    out4 = cross_entropy_label_smooth_ohem(x2_bf16, t2, num_classes=num_classes2,
                                           block_b=8, block_c=128)
    out4 = jax.block_until_ready(out4)
    ref4 = _reference(x2_bf16.astype(jnp.float32), t2, num_classes=num_classes2)
    assert jnp.allclose(out4, ref4, rtol=1e-4, atol=1e-5), (out4, ref4)

    # --- Test 5: default tiling on the multi-tile inputs (batch split into 2 steps) ---
    out5 = cross_entropy_label_smooth_ohem(x2, t2, num_classes=num_classes2)
    out5 = jax.block_until_ready(out5)
    assert jnp.allclose(out5, ref2, rtol=1e-5, atol=1e-6), (out5, ref2)

    print("KERNEL_OK")
</pallas_src>

<mosaic_0001>
module attributes {stable_mosaic.version = 11 : i64} {
  func.func @_per_sample_loss_kernel(%arg0: i32, %arg1: i32, %arg2: memref<8x16xf32, #tpu.memory_space<vmem>>, %arg3: memref<8x1xf32, #tpu.memory_space<vmem>>, %arg4: memref<8x1xf32, #tpu.memory_space<vmem>>, %arg5: memref<8x1xf32, #tpu.memory_space<vmem>>, %arg6: memref<8x1xf32, #tpu.memory_space<vmem>>, %arg7: memref<8x1xf32, #tpu.memory_space<vmem>>) attributes {dimension_semantics = [#tpu.dimension_semantics<parallel>, #tpu.dimension_semantics<arbitrary>], iteration_bounds = array<i64: 1, 1>, scalar_prefetch = 0 : i64, scratch_operands = 3 : i64, tpu.core_type = #tpu.core_type<tc>, window_params = [{transform_indices = @transform_0, window_bounds = array<i64: 8, 16>}, {transform_indices = @transform_1, window_bounds = array<i64: 8, 1>}, {transform_indices = @transform_2, window_bounds = array<i64: 8, 1>}]} {
    %c0_i32 = arith.constant 0 : i32
    %0 = arith.cmpi eq, %arg1, %c0_i32 : i32
    %1 = arith.extui %0 : i1 to i32
    %c0_i32_0 = arith.constant 0 : i32
    %2 = arith.cmpi ne, %1, %c0_i32_0 : i32
    scf.if %2 {
      %cst_20 = arith.constant 0xFF800000 : f32
      %29 = vector.broadcast %cst_20 : f32 to vector<8x1xf32>
      %c0_21 = arith.constant 0 : index
      %c0_22 = arith.constant 0 : index
      %30 = vector.load %arg5[%c0_21, %c0_22] : memref<8x1xf32, #tpu.memory_space<vmem>>, vector<8x1xf32>
      tpu.vector_store %arg5[%c0_21, %c0_22], %29 {strides = array<i32>} : memref<8x1xf32, #tpu.memory_space<vmem>>, vector<8x1xf32>,
      %cst_23 = arith.constant 0.000000e+00 : f32
      %31 = vector.broadcast %cst_23 : f32 to vector<8x1xf32>
      %c0_24 = arith.constant 0 : index
      %c0_25 = arith.constant 0 : index
      %32 = vector.load %arg6[%c0_24, %c0_25] : memref<8x1xf32, #tpu.memory_space<vmem>>, vector<8x1xf32>
      tpu.vector_store %arg6[%c0_24, %c0_25], %31 {strides = array<i32>} : memref<8x1xf32, #tpu.memory_space<vmem>>, vector<8x1xf32>,
      %cst_26 = arith.constant 0.000000e+00 : f32
      %33 = vector.broadcast %cst_26 : f32 to vector<8x1xf32>
      %c0_27 = arith.constant 0 : index
      %c0_28 = arith.constant 0 : index
      %34 = vector.load %arg7[%c0_27, %c0_28] : memref<8x1xf32, #tpu.memory_space<vmem>>, vector<8x1xf32>
      tpu.vector_store %arg7[%c0_27, %c0_28], %33 {strides = array<i32>} : memref<8x1xf32, #tpu.memory_space<vmem>>, vector<8x1xf32>,
    } else {
    }
    %c0 = arith.constant 0 : index
    %c0_1 = arith.constant 0 : index
    %3 = vector.load %arg2[%c0, %c0_1] : memref<8x16xf32, #tpu.memory_space<vmem>>, vector<8x16xf32>
    %cst = arith.constant dense<0xFF800000> : vector<8xf32>
    %4 = vector.multi_reduction <maximumf>, %3, %cst [1] : vector<8x16xf32> to vector<8xf32>
    %5 = vector.shape_cast %4 : vector<8xf32> to vector<8x1xf32>
    %c0_2 = arith.constant 0 : index
    %c0_3 = arith.constant 0 : index
    %6 = vector.load %arg5[%c0_2, %c0_3] : memref<8x1xf32, #tpu.memory_space<vmem>>, vector<8x1xf32>
    %7 = arith.maximumf %6, %5 : vector<8x1xf32>
    %c0_4 = arith.constant 0 : index
    %c0_5 = arith.constant 0 : index
    %8 = vector.load %arg6[%c0_4, %c0_5] : memref<8x1xf32, #tpu.memory_space<vmem>>, vector<8x1xf32>
    %c0_6 = arith.constant 0 : index
    %c0_7 = arith.constant 0 : index
    %9 = vector.load %arg5[%c0_6, %c0_7] : memref<8x1xf32, #tpu.memory_space<vmem>>, vector<8x1xf32>
    %10 = arith.subf %9, %7 : vector<8x1xf32>
    %11 = math.exp %10 : vector<8x1xf32>
    %12 = arith.mulf %8, %11 : vector<8x1xf32>
    %13 = vector.broadcast %7 : vector<8x1xf32> to vector<8x16xf32>
    %14 = arith.subf %3, %13 : vector<8x16xf32>
    %15 = math.exp %14 : vector<8x16xf32>
    %cst_8 = arith.constant dense<0.000000e+00> : vector<8xf32>
    %16 = vector.multi_reduction <add>, %15, %cst_8 [1] : vector<8x16xf32> to vector<8xf32>
    %17 = vector.shape_cast %16 : vector<8xf32> to vector<8x1xf32>
    %18 = arith.addf %12, %17 : vector<8x1xf32>
    %c0_9 = arith.constant 0 : index
    %c0_10 = arith.constant 0 : index
    %19 = vector.load %arg6[%c0_9, %c0_10] : memref<8x1xf32, #tpu.memory_space<vmem>>, vector<8x1xf32>
    tpu.vector_store %arg6[%c0_9, %c0_10], %18 {strides = array<i32>} : memref<8x1xf32, #tpu.memory_space<vmem>>, vector<8x1xf32>,
    %c0_11 = arith.constant 0 : index
    %c0_12 = arith.constant 0 : index
    %20 = vector.load %arg5[%c0_11, %c0_12] : memref<8x1xf32, #tpu.memory_space<vmem>>, vector<8x1xf32>
    tpu.vector_store %arg5[%c0_11, %c0_12], %7 {strides = array<i32>} : memref<8x1xf32, #tpu.memory_space<vmem>>, vector<8x1xf32>,
    %c0_13 = arith.constant 0 : index
    %c0_14 = arith.constant 0 : index
    %21 = vector.load %arg7[%c0_13, %c0_14] : memref<8x1xf32, #tpu.memory_space<vmem>>, vector<8x1xf32>
    %cst_15 = arith.constant dense<0.000000e+00> : vector<8xf32>
    %22 = vector.multi_reduction <add>, %3, %cst_15 [1] : vector<8x16xf32> to vector<8xf32>
    %23 = vector.shape_cast %22 : vector<8xf32> to vector<8x1xf32>
    %24 = arith.addf %21, %23 : vector<8x1xf32>
    %c0_16 = arith.constant 0 : index
    %c0_17 = arith.constant 0 : index
    %25 = vector.load %arg7[%c0_16, %c0_17] : memref<8x1xf32, #tpu.memory_space<vmem>>, vector<8x1xf32>
    tpu.vector_store %arg7[%c0_16, %c0_17], %24 {strides = array<i32>} : memref<8x1xf32, #tpu.memory_space<vmem>>, vector<8x1xf32>,
    %c0_i32_18 = arith.constant 0 : i32
    %26 = arith.cmpi eq, %arg1, %c0_i32_18 : i32
    %27 = arith.extui %26 : i1 to i32
    %c0_i32_19 = arith.constant 0 : i32
    %28 = arith.cmpi ne, %27, %c0_i32_19 : i32
    scf.if %28 {
      %c0_20 = arith.constant 0 : index
      %c0_21 = arith.constant 0 : index
      %29 = vector.load %arg5[%c0_20, %c0_21] : memref<8x1xf32, #tpu.memory_space<vmem>>, vector<8x1xf32>
      %c0_22 = arith.constant 0 : index
      %c0_23 = arith.constant 0 : index
      %30 = vector.load %arg6[%c0_22, %c0_23] : memref<8x1xf32, #tpu.memory_space<vmem>>, vector<8x1xf32>
      %31 = math.log %30 : vector<8x1xf32>
      %32 = arith.addf %29, %31 : vector<8x1xf32>
      %c0_24 = arith.constant 0 : index
      %c0_25 = arith.constant 0 : index
      %33 = vector.load %arg3[%c0_24, %c0_25] : memref<8x1xf32, #tpu.memory_space<vmem>>, vector<8x1xf32>
      %34 = arith.subf %33, %32 : vector<8x1xf32>
      %c0_26 = arith.constant 0 : index
      %c0_27 = arith.constant 0 : index
      %35 = vector.load %arg7[%c0_26, %c0_27] : memref<8x1xf32, #tpu.memory_space<vmem>>, vector<8x1xf32>
      %cst_28 = arith.constant 1.600000e+01 : f32
      %36 = vector.broadcast %cst_28 : f32 to vector<8x1xf32>
      %37 = arith.mulf %36, %32 : vector<8x1xf32>
      %38 = arith.subf %35, %37 : vector<8x1xf32>
      %cst_29 = arith.constant 0.899999976 : f32
      %39 = vector.broadcast %cst_29 : f32 to vector<8x1xf32>
      %40 = arith.mulf %39, %34 : vector<8x1xf32>
      %cst_30 = arith.constant 6.250000e-03 : f32
      %41 = vector.broadcast %cst_30 : f32 to vector<8x1xf32>
      %42 = arith.mulf %41, %38 : vector<8x1xf32>
      %43 = arith.addf %40, %42 : vector<8x1xf32>
      %cst_31 = arith.constant 0.000000e+00 : f32
      %44 = vector.broadcast %cst_31 : f32 to vector<8x1xf32>
      %45 = arith.subf %44, %43 : vector<8x1xf32>
      %cst_32 = arith.constant 0.000000e+00 : f32
      %46 = vector.broadcast %cst_32 : f32 to vector<8x1xf32>
      %47 = arith.maximumf %45, %46 : vector<8x1xf32>
      %c0_33 = arith.constant 0 : index
      %c0_34 = arith.constant 0 : index
      %48 = vector.load %arg4[%c0_33, %c0_34] : memref<8x1xf32, #tpu.memory_space<vmem>>, vector<8x1xf32>
      tpu.vector_store %arg4[%c0_33, %c0_34], %47 {strides = array<i32>} : memref<8x1xf32, #tpu.memory_space<vmem>>, vector<8x1xf32>,
    } else {
    }
    return
  }
  func.func @transform_0(%arg0: i32, %arg1: i32) -> (i32, i32) {
    %c0_i32 = arith.constant 0 : i32
    return %arg0, %arg1 : i32, i32
  }
  func.func @transform_1(%arg0: i32, %arg1: i32) -> (i32, i32) {
    %c0_i32 = arith.constant 0 : i32
    %c0_i32_0 = arith.constant 0 : i32
    return %arg0, %c0_i32 : i32, i32
  }
  func.func @transform_2(%arg0: i32, %arg1: i32) -> (i32, i32) {
    %c0_i32 = arith.constant 0 : i32
    %c0_i32_0 = arith.constant 0 : i32
    return %arg0, %c0_i32 : i32, i32
  }
}

</mosaic_0001>

<bundles_post_ra>
// kernel: tpu_custom_call.1
= control target key start
LH: loop header
LB: loop body
LE: loop exit
PB: predicated region body
PF: predicated region fallthrough
CT: control target
= control target key end

     0   :  { %vm20_vm0 = vcmask 130048   ;;  %vm15_vm1 = vcmask 7168   ;;  %v85_v1 = vmov -inf   ;;  %v86_v3 = vmov 0   ;;  %s122_s0 = inlined_call_operand.vmem [shape: f32[8,16], index: 0, kind: input, shape index: {}]   ;;  %s123_s1 = inlined_call_operand.vmem [shape: f32[8,1], index: 1, kind: input, shape index: {}]   ;;  %s124_s2 = inlined_call_operand.vmem [shape: f32[8,1], index: 2, kind: output, shape index: {}]  }
   0x1   :  { %v19_v0 = vld [vmem:[%s122_s0] sm:$0xff]  ;;  %16 = vst.msk [vmem:[#allocation2] sm:$0xff] %vm15_vm1, %v85_v1  ;;  %78 = vset.pattern.permute.xlu0 %v86_v3  ;;  %v87_v4 = vmov 0.0  }
   0x2   :  { %v21_v2 = vsel %vm20_vm0, %v19_v0, -inf  ;;  %17 = vst.msk [vmem:[#allocation3] sm:$0xff] %vm15_vm1, %v87_v4  ;;  %18 = vst.msk [vmem:[#allocation4] sm:$0xff] %vm15_vm1, %v87_v4  ;;  %v47_v14 = vsel %vm20_vm0, %v19_v0, 0.0  ;;  %v60_v28 = vld [vmem:[%s123_s1] sm:$0xff] }
   0x3   :  { %22 = vmax.xlane.f32.xlu0 %v21_v2 }
   0x8   :  { %v24_v5 = vld [vmem:[#allocation2] sm:$0xff] }
   0x9   :  { %v26_v17 = vld [vmem:[#allocation3] sm:$0xff]  ;;  %v46_v21 = vld [vmem:[#allocation4] sm:$0xff] }
  0x90   :  { %v23_v6 = vpop.xlane.xlu0 %22 }
  0x91   :  { %v25_v7 = vmax.f32 %v24_v5, %v23_v6 }
  0x93   :  { %v27_v8 = vsub.f32 %v24_v5, %v25_v7  ;;  %45 = vst.msk [vmem:[#allocation2] sm:$0xff] %vm15_vm1, %v25_v7  ;;  %33 = vperm.xlu0 %78, %v25_v7  }
  0x95   :  { %v28_v15 = vmul.f32 1.442695, %v27_v8 }
  0x9a   :  { %v55_v27 = vld [vmem:[#allocation2] sm:$0xff] }
 0x112   :  { %v34_v9 = vpop.permute.xlu0 %33 }
 0x113   :  { %v36_v10 = vsub.f32 %v19_v0, %v34_v9 }
 0x115   :  { %v37_v11 = vmul.f32 1.442695, %v36_v10 }
 0x117   :  { %79 = vpow2.f32 %v37_v11 }
 0x118   :  { %81 = vpow2.f32 %v28_v15 }
 0x121   :  { %v80_v12 = vpop.eup %79 }
 0x122   :  { %v39_v13 = vsel %vm20_vm0, %v80_v12, 0.0  ;;  %v82_v16 = vpop.eup %81 }
 0x123   :  { %40 = vadd.xlane.f32.xlu1 %v39_v13  ;;  %v30_v18 = vmul.f32 %v82_v16, %v26_v17 }
 0x127   :  { %48 = vadd.xlane.f32.xlu1 %v47_v14 }
 0x1b0   :  { %v41_v19 = vpop.xlane.xlu1 %40 }
 0x1b1   :  { %v42_v20 = vadd.f32 %v41_v19, %v30_v18 }
 0x1b3   :  { %44 = vst.msk [vmem:[#allocation3] sm:$0xff] %vm15_vm1, %v42_v20 }
 0x1b4   :  { %v49_v22 = vpop.xlane.xlu1 %48 }
 0x1b5   :  { %v50_v23 = vadd.f32 %v49_v22, %v46_v21 }
 0x1b7   :  { %51 = vst.msk [vmem:[#allocation4] sm:$0xff] %vm15_vm1, %v50_v23 }
 0x1ba   :  { %v56_v24 = vld [vmem:[#allocation3] sm:$0xff] }
 0x1bb   :  { %83 = vlog2.f32 %v56_v24 }
 0x1be   :  { %v62_v30 = vld [vmem:[#allocation4] sm:$0xff] }
 0x1c5   :  { %v84_v25 = vpop.eup %83 }
 0x1c6   :  { %v58_v26 = vmul.f32 0.6931472, %v84_v25 }
 0x1c8   :  { %v59_v29 = vadd.f32 %v58_v26, %v55_v27 }
 0x1ca   :  { %v61_v31 = vsub.f32 %v60_v28, %v59_v29  ;;  %v63_v32 = vmul.f32 16.0, %v59_v29 }
 0x1cc   :  { %v64_v33 = vsub.f32 %v62_v30, %v63_v32  ;;  %v65_v34 = vmul.f32 0.9, %v61_v31 }
 0x1ce   :  { %v66_v35 = vmul.f32 0.00625, %v64_v33 }
 0x1d0   :  { %v67_v36 = vadd.f32 %v66_v35, %v65_v34 }
 0x1d2   :  { %v68_v37 = vsub.f32 0.0, %v67_v36 }
 0x1d4   :  { %v69_v38 = vmax.f32 %v68_v37, 0.0 }
 0x1d6   :  { %70 = vst.msk [vmem:[%s124_s2] sm:$0xff] %vm15_vm1, %v69_v38 }

</bundles_post_ra>
